<compile_context>
chip_gen: v5e
topology: v5e:2x2
jax: 0.10.0
libtpu: 0.0.40
codegen_flags: <defaults>
</compile_context>

<pallas_src>
import functools

import jax
import jax.numpy as jnp
from jax.experimental import pallas as pl
from jax.experimental.pallas import tpu as pltpu


def _round_up(x, m):
    return (x + m - 1) // m * m


def highway_kernel(x_ref, w_ref, b_ref, o_ref, *, e_pad):
    # x tile: (tm, E_pad); fused weights: (E_pad, 2*E_pad); fused bias: (1, 2*E_pad)
    x = x_ref[...].astype(jnp.float32)          # single upfront cast (bf16-safe elementwise path)
    y = jnp.dot(x_ref[...], w_ref[...],         # one fused MXU matmul for proj|gate
                preferred_element_type=jnp.float32)
    y = y + b_ref[...].astype(jnp.float32)
    proj = jnp.maximum(y[:, :e_pad], 0.0)       # ReLU half (VPU)
    gate = jax.nn.sigmoid(y[:, e_pad:])         # sigmoid half (EUP slot, ~free)
    # highway combine with one fewer multiply: x + g*(p - x)
    o_ref[...] = (x + gate * (proj - x)).astype(o_ref.dtype)


def prepare_highway_params(w1, b1, w2, b2):
    """One-time preprocessing (call once, reuse across forward calls).

    Transposes the PyTorch (out, in) weights to (in, out), fuses W1|W2 and
    b1|b2, and zero-pads the feature dim to a multiple of 128 so the kernel
    sees lane-dense, MXU-friendly operands.  Hoisting this out of the per-call
    jit path avoids re-materializing E x E transposes in HBM every forward.
    """
    e_word = w1.shape[0]
    e_pad = _round_up(max(e_word, 128), 128)
    pad = e_pad - e_word
    w1_t = jnp.pad(w1.T, ((0, pad), (0, pad)))
    w2_t = jnp.pad(w2.T, ((0, pad), (0, pad)))
    w_fused = jnp.concatenate([w1_t, w2_t], axis=1)              # (E_pad, 2*E_pad)
    b_fused = jnp.concatenate(
        [jnp.pad(b1, (0, pad)), jnp.pad(b2, (0, pad))]).reshape(1, 2 * e_pad)
    return w_fused, b_fused


def _choose_tile_rows(m_rows, e_pad, itemsize):
    """Pick a large row tile under a conservative VMEM budget (v7x-safe)."""
    sub = 8 if itemsize >= 4 else 16            # f32 / bf16 sublane packing

    def vmem_bytes(t):
        # double-buffered x/out tiles (f32-equivalent) + 2x resident fused weights
        return 4 * t * e_pad * 4 + 2 * (e_pad * 2 * e_pad) * itemsize

    tm = 1024
    while tm > 8 * sub and vmem_bytes(tm) > 24 * 1024 * 1024:
        tm //= 2
    tm = min(tm, _round_up(m_rows, sub))        # don't over-pad tiny inputs
    return max(sub, _round_up(tm, sub))


@functools.partial(jax.jit, static_argnames=("tm",))
def highway_forward(x_conv_out, w_fused, b_fused, *, tm=None):
    """x_conv_out: (L, B, E). w_fused/b_fused come from prepare_highway_params."""
    L, B, E = x_conv_out.shape
    e_pad = w_fused.shape[0]
    assert w_fused.shape == (e_pad, 2 * e_pad) and E <= e_pad

    M = L * B
    itemsize = jnp.dtype(x_conv_out.dtype).itemsize
    if tm is None:
        tm = _choose_tile_rows(M, e_pad, itemsize)
    m_pad = _round_up(M, tm)                    # padded tail replaces the old assert
    grid = (m_pad // tm,)

    x2d = x_conv_out.reshape(M, E)
    x_p = jnp.pad(x2d, ((0, m_pad - M), (0, e_pad - E)))

    # VMEM budget: double-buffered x/out tiles + resident fused weights/bias,
    # with 2x headroom; clamp to v7x's 64 MiB physical VMEM.
    est = (4 * tm * e_pad * 4
           + 2 * w_fused.size * jnp.dtype(w_fused.dtype).itemsize
           + 2 * b_fused.size * 4)
    vmem_limit = int(min(max(2 * est, 32 * 1024 * 1024), 64 * 1024 * 1024))

    out_p = pl.pallas_call(
        functools.partial(highway_kernel, e_pad=e_pad),
        out_shape=jax.ShapeDtypeStruct((m_pad, e_pad), x_conv_out.dtype),
        grid_spec=pltpu.PrefetchScalarGridSpec(
            num_scalar_prefetch=0,
            grid=grid,
            in_specs=[
                # large, lane-dense row tile of the (padded) input
                pl.BlockSpec((tm, e_pad), lambda i: (i, 0)),
                # fused W1|W2 and b1|b2: constant index_map -> resident in VMEM,
                # DMA'd once.  (On JAX versions that accept it, adding
                # pipeline_mode=pl.Buffered(1) would also drop their second
                # pipeline buffer and free more VMEM headroom.)
                pl.BlockSpec((e_pad, 2 * e_pad), lambda i: (0, 0)),
                pl.BlockSpec((1, 2 * e_pad), lambda i: (0, 0)),
            ],
            out_specs=pl.BlockSpec((tm, e_pad), lambda i: (i, 0)),
        ),
        compiler_params=pltpu.CompilerParams(
            dimension_semantics=("parallel",),   # rows shard across v7x's 2 TCs
            vmem_limit_bytes=vmem_limit,
        ),
    )(x_p, w_fused, b_fused)

    return out_p[:M, :E].reshape(L, B, E)


def reference_highway(x, w1, b1, w2, b2):
    proj = jax.nn.relu(jnp.einsum("lbe,oe->lbo", x, w1) + b1)
    gate = jax.nn.sigmoid(jnp.einsum("lbe,oe->lbo", x, w2) + b2)
    return gate * proj + (1.0 - gate) * x


if __name__ == "__main__":
    key = jax.random.PRNGKey(0)
    kx, k1, k2, k3, k4, kx2 = jax.random.split(key, 6)

    E = 32  # e_word
    # deterministic synthetic parameters (PyTorch nn.Linear layout: (out, in))
    w1 = jax.random.normal(k1, (E, E), dtype=jnp.float32) * 0.1
    b1 = jax.random.normal(k2, (E,), dtype=jnp.float32) * 0.1
    w2 = jax.random.normal(k3, (E, E), dtype=jnp.float32) * 0.1
    b2 = jax.random.normal(k4, (E,), dtype=jnp.float32) * 0.1

    # one-time weight prep (transpose + fuse + pad), reused for every forward
    w_fused, b_fused = prepare_highway_params(w1, b1, w2, b2)

    # (max_sentence_length, batch_size, e_word)
    x = jax.random.normal(kx, (8, 2, E), dtype=jnp.float32)
    out = jax.block_until_ready(highway_forward(x, w_fused, b_fused))
    ref = reference_highway(x, w1, b1, w2, b2)
    assert out.shape == x.shape
    assert jnp.allclose(out, ref, atol=1e-5, rtol=1e-5), "mismatch vs reference"

    # ragged row count (L*B not a multiple of the row tile) exercises the
    # padded-tail path that replaced the old `M % tm == 0` assert
    x2 = jax.random.normal(kx2, (7, 3, E), dtype=jnp.float32)
    out2 = jax.block_until_ready(highway_forward(x2, w_fused, b_fused))
    ref2 = reference_highway(x2, w1, b1, w2, b2)
    assert out2.shape == x2.shape
    assert jnp.allclose(out2, ref2, atol=1e-5, rtol=1e-5), "mismatch (ragged)"

    print("KERNEL_OK")
</pallas_src>

<mosaic_0001>
module attributes {stable_mosaic.version = 11 : i64} {
  func.func @highway_kernel(%arg0: i32, %arg1: memref<16x128xf32, #tpu.memory_space<vmem>>, %arg2: memref<128x256xf32, #tpu.memory_space<vmem>>, %arg3: memref<1x256xf32, #tpu.memory_space<vmem>>, %arg4: memref<16x128xf32, #tpu.memory_space<vmem>>) attributes {dimension_semantics = [#tpu.dimension_semantics<parallel>], iteration_bounds = array<i64: 1>, scalar_prefetch = 0 : i64, scratch_operands = 0 : i64, tpu.core_type = #tpu.core_type<tc>, window_params = [{transform_indices = @transform_0, window_bounds = array<i64: 16, 128>}, {pipeline_mode = #tpu.pipeline_mode<synchronous>, transform_indices = @transform_1, window_bounds = array<i64: 128, 256>}, {pipeline_mode = #tpu.pipeline_mode<synchronous>, transform_indices = @transform_2, window_bounds = array<i64: 1, 256>}, {transform_indices = @transform_3, window_bounds = array<i64: 16, 128>}]} {
    %c0 = arith.constant 0 : index
    %c0_0 = arith.constant 0 : index
    %0 = vector.load %arg1[%c0, %c0_0] : memref<16x128xf32, #tpu.memory_space<vmem>>, vector<16x128xf32>
    %c0_1 = arith.constant 0 : index
    %c0_2 = arith.constant 0 : index
    %1 = vector.load %arg1[%c0_1, %c0_2] : memref<16x128xf32, #tpu.memory_space<vmem>>, vector<16x128xf32>
    %c0_3 = arith.constant 0 : index
    %c0_4 = arith.constant 0 : index
    %2 = vector.load %arg2[%c0_3, %c0_4] : memref<128x256xf32, #tpu.memory_space<vmem>>, vector<128x256xf32>
    %cst = arith.constant dense<0.000000e+00> : vector<16x256xf32>
    %3 = tpu.matmul %1, %2, %cst {dimension_numbers = #tpu.dot_dimension_numbers<[1], [0], [0], [1], [0, 0, 1, 1], [], []>} : vector<16x128xf32>, vector<128x256xf32>, vector<16x256xf32> -> vector<16x256xf32>
    %c0_5 = arith.constant 0 : index
    %c0_6 = arith.constant 0 : index
    %4 = vector.load %arg3[%c0_5, %c0_6] : memref<1x256xf32, #tpu.memory_space<vmem>>, vector<1x256xf32>
    %5 = vector.broadcast %4 : vector<1x256xf32> to vector<16x256xf32>
    %6 = arith.addf %3, %5 : vector<16x256xf32>
    %7 = vector.extract_strided_slice %6 {offsets = [0, 0], sizes = [16, 128], strides = [1, 1]} : vector<16x256xf32> to vector<16x128xf32>
    %cst_7 = arith.constant 0.000000e+00 : f32
    %8 = vector.broadcast %cst_7 : f32 to vector<16x128xf32>
    %9 = arith.maximumf %7, %8 : vector<16x128xf32>
    %10 = vector.extract_strided_slice %6 {offsets = [0, 128], sizes = [16, 128], strides = [1, 1]} : vector<16x256xf32> to vector<16x128xf32>
    %11 = arith.negf %10 : vector<16x128xf32>
    %12 = math.exp %11 : vector<16x128xf32>
    %cst_8 = arith.constant 1.000000e+00 : f32
    %13 = vector.broadcast %cst_8 : f32 to vector<16x128xf32>
    %14 = arith.addf %13, %12 : vector<16x128xf32>
    %15 = arith.divf %13, %14 : vector<16x128xf32>
    %16 = arith.subf %9, %0 : vector<16x128xf32>
    %17 = arith.mulf %15, %16 : vector<16x128xf32>
    %18 = arith.addf %0, %17 : vector<16x128xf32>
    %c0_9 = arith.constant 0 : index
    %c0_10 = arith.constant 0 : index
    %19 = vector.load %arg4[%c0_9, %c0_10] : memref<16x128xf32, #tpu.memory_space<vmem>>, vector<16x128xf32>
    tpu.vector_store %arg4[%c0_9, %c0_10], %18 {strides = array<i32>} : memref<16x128xf32, #tpu.memory_space<vmem>>, vector<16x128xf32>,
    return
  }
  func.func @transform_0(%arg0: i32) -> (i32, i32) {
    %c0_i32 = arith.constant 0 : i32
    %c0_i32_0 = arith.constant 0 : i32
    return %arg0, %c0_i32 : i32, i32
  }
  func.func @transform_1(%arg0: i32) -> (i32, i32) {
    %c0_i32 = arith.constant 0 : i32
    %c0_i32_0 = arith.constant 0 : i32
    %c0_i32_1 = arith.constant 0 : i32
    return %c0_i32, %c0_i32_0 : i32, i32
  }
  func.func @transform_2(%arg0: i32) -> (i32, i32) {
    %c0_i32 = arith.constant 0 : i32
    %c0_i32_0 = arith.constant 0 : i32
    %c0_i32_1 = arith.constant 0 : i32
    return %c0_i32, %c0_i32_0 : i32, i32
  }
  func.func @transform_3(%arg0: i32) -> (i32, i32) {
    %c0_i32 = arith.constant 0 : i32
    %c0_i32_0 = arith.constant 0 : i32
    return %arg0, %c0_i32 : i32, i32
  }
}

</mosaic_0001>

<bundles_post_ra>
// kernel: highway_forward.1
= control target key start
LH: loop header
LB: loop body
LE: loop exit
PB: predicated region body
PF: predicated region fallthrough
CT: control target
= control target key end

     0   :  { %8 = vsyncpa [#allocation3], 0  ;;  %s337_s0 = inlined_call_operand.vmem [shape: f32[16,128], index: 0, kind: input, shape index: {}]   ;;  %s338_s1 = inlined_call_operand.hbm [shape: f32[128,256], index: 1, kind: input, shape index: {}]   ;;  %s339_s2 = inlined_call_operand.vmem [shape: f32[1,256], index: 2, kind: input, shape index: {}]   ;;  %s340_s3 = inlined_call_operand.hbm [shape: f32[16,128], index: 3, kind: output, shape index: {}]  }
   0x1   :  { %9 = vsyncpa [#allocation4], 0  ;;  %s16_s14 = sshll.u32 %s338_s1, 4  ;;  %s284_s15 = smov [#allocation2]   ;;  %s17_s14 = int_to_ptr.hbm [resolvable:$true] %s16_s14 }
   0x2   :  { %s18_s16 = sshll.u32 %s284_s15, 4  ;;  %s285_s17 = smov 256   ;;  %s19_s16 = int_to_ptr.vmem [resolvable:$true] %s18_s16 }
   0x3   :  { %s286_s18 = smov 16  }
   0x4   :  { %24 = dma.hbm_to_vmem [thread:$0]  %s17_s14, 4096, %s19_s16, [#allocation3], %s285_s17, %s285_s17, %s286_s18  }
   0x5   :  { %280 = dma.done.wait [#allocation3], 4096  }
   0x6   :  { %281 = vsyncadd [#allocation3], 4294963200  ;;  %v64_v0 = vld [vmem:[#allocation2 + $0xf8] sm:$0xff]  ;;  %v62_v1 = vld [vmem:[#allocation2 + $0xe8] sm:$0xff]  ;;  %s171_s26 = sshll.u32 %s340_s3, 4  ;;  %s288_s27 = smov 128   ;;  %s172_s26 = int_to_ptr.hbm [resolvable:$true] %s171_s26 }
   0x7   :  { %94 = vmatpush.msra.mxu1 %v64_v0  ;;  %202 = vmatpush.msra.mxu3 %v64_v0  ;;  %v60_v2 = vld [vmem:[#allocation2 + $0xd8] sm:$0xff]  ;;  %v58_v3 = vld [vmem:[#allocation2 + $0xc8] sm:$0xff]  ;;  %v63_v4 = vld [vmem:[#allocation2 + $0xf0] sm:$0xff]  ;;  %s289_s28 = smov 8  }
   0x8   :  { %v61_v5 = vld [vmem:[#allocation2 + $0xe0] sm:$0xff]  ;;  %v56_v6 = vld [vmem:[#allocation2 + $0xb8] sm:$0xff]  ;;  %71 = vmatpush.msra.mxu0 %v63_v4  ;;  %186 = vmatpush.msra.mxu2 %v63_v4  ;;  %v59_v7 = vld [vmem:[#allocation2 + $0xd0] sm:$0xff] }
   0x9   :  { %95 = vmatpush.msra.mxu1 %v62_v1  ;;  %203 = vmatpush.msra.mxu3 %v62_v1  ;;  %v54_v8 = vld [vmem:[#allocation2 + $0xa8] sm:$0xff]  ;;  %v57_v9 = vld [vmem:[#allocation2 + $0xc0] sm:$0xff]  ;;  %v52_v10 = vld [vmem:[#allocation2 + $0x98] sm:$0xff] }
   0xa   :  { %72 = vmatpush.msra.mxu0 %v61_v5  ;;  %187 = vmatpush.msra.mxu2 %v61_v5  ;;  %v55_v11 = vld [vmem:[#allocation2 + $0xb0] sm:$0xff]  ;;  %v50_v12 = vld [vmem:[#allocation2 + $0x88] sm:$0xff]  ;;  %v53_v13 = vld [vmem:[#allocation2 + $0xa0] sm:$0xff] }
   0xb   :  { %96 = vmatpush.msra.mxu1 %v60_v2  ;;  %204 = vmatpush.msra.mxu3 %v60_v2  ;;  %v48_v14 = vld [vmem:[#allocation2 + $0x78] sm:$0xff]  ;;  %v51_v15 = vld [vmem:[#allocation2 + $0x90] sm:$0xff]  ;;  %v46_v16 = vld [vmem:[#allocation2 + $0x68] sm:$0xff] }
   0xc   :  { %73 = vmatpush.msra.mxu0 %v59_v7  ;;  %188 = vmatpush.msra.mxu2 %v59_v7  ;;  %v49_v17 = vld [vmem:[#allocation2 + $0x80] sm:$0xff]  ;;  %v44_v18 = vld [vmem:[#allocation2 + $0x58] sm:$0xff]  ;;  %v47_v19 = vld [vmem:[#allocation2 + $0x70] sm:$0xff] }
   0xd   :  { %97 = vmatpush.msra.mxu1 %v58_v3  ;;  %205 = vmatpush.msra.mxu3 %v58_v3  ;;  %v42_v20 = vld [vmem:[#allocation2 + $0x48] sm:$0xff]  ;;  %v45_v21 = vld [vmem:[#allocation2 + $0x60] sm:$0xff]  ;;  %v40_v22 = vld [vmem:[#allocation2 + $0x38] sm:$0xff] }
   0xe   :  { %74 = vmatpush.msra.mxu0 %v57_v9  ;;  %189 = vmatpush.msra.mxu2 %v57_v9  ;;  %v43_v23 = vld [vmem:[#allocation2 + $0x50] sm:$0xff]  ;;  %v38_v24 = vld [vmem:[#allocation2 + $0x28] sm:$0xff]  ;;  %v41_v25 = vld [vmem:[#allocation2 + $0x40] sm:$0xff] }
   0xf   :  { %98 = vmatpush.msra.mxu1 %v56_v6  ;;  %206 = vmatpush.msra.mxu3 %v56_v6  ;;  %v36_v26 = vld [vmem:[#allocation2 + $0x18] sm:$0xff]  ;;  %v39_v27 = vld [vmem:[#allocation2 + $0x30] sm:$0xff]  ;;  %v34_v28 = vld [vmem:[#allocation2 + $0x8] sm:$0xff] }
  0x10   :  { %75 = vmatpush.msra.mxu0 %v55_v11  ;;  %190 = vmatpush.msra.mxu2 %v55_v11  ;;  %v316_v29 = vld [vmem:[%s337_s0] sm:$0xff]  ;;  %v321_v30 = vld [vmem:[%s337_s0 + $0x8] sm:$0xff]  ;;  %v35_v32 = vld [vmem:[#allocation2 + $0x10] sm:$0xff] }
  0x11   :  { %99 = vmatpush.msra.mxu1 %v54_v8  ;;  %207 = vmatpush.msra.mxu3 %v54_v8  ;;  %v37_v31 = vld [vmem:[#allocation2 + $0x20] sm:$0xff] }
  0x12   :  { %76 = vmatpush.msra.mxu0 %v53_v13  ;;  %191 = vmatpush.msra.mxu2 %v53_v13  ;;  %v33_v33 = vld [vmem:[#allocation2] sm:$0xff] }
  0x13   :  { %100 = vmatpush.msra.mxu1 %v52_v10  ;;  %208 = vmatpush.msra.mxu3 %v52_v10  ;;  %v65_v34 = vld [vmem:[%s339_s2] sm:$0x3]  ;;  %s287_s2 = smov [#allocation5]  }
  0x14   :  { %77 = vmatpush.msra.mxu0 %v51_v15  ;;  %192 = vmatpush.msra.mxu2 %v51_v15  ;;  %v68_v35 = vperm.slane %v65_v34, 1  ;;  %v67_v44 = vperm.slane %v65_v34, 0  ;;  %s169_s23 = sshll.u32 %s287_s2, 4  ;;  %s170_s23 = int_to_ptr.vmem [resolvable:$true] %s169_s23 }
  0x15   :  { %101 = vmatpush.msra.mxu1 %v50_v12  ;;  %209 = vmatpush.msra.mxu3 %v50_v12 }
  0x16   :  { %78 = vmatpush.msra.mxu0 %v49_v17  ;;  %193 = vmatpush.msra.mxu2 %v49_v17 }
  0x17   :  { %102 = vmatpush.msra.mxu1 %v48_v14  ;;  %210 = vmatpush.msra.mxu3 %v48_v14 }
  0x18   :  { %79 = vmatpush.msra.mxu0 %v47_v19  ;;  %194 = vmatpush.msra.mxu2 %v47_v19 }
  0x19   :  { %103 = vmatpush.msra.mxu1 %v46_v16  ;;  %211 = vmatpush.msra.mxu3 %v46_v16 }
  0x1a   :  { %80 = vmatpush.msra.mxu0 %v45_v21  ;;  %195 = vmatpush.msra.mxu2 %v45_v21 }
  0x1b   :  { %104 = vmatpush.msra.mxu1 %v44_v18  ;;  %212 = vmatpush.msra.mxu3 %v44_v18 }
  0x1c   :  { %81 = vmatpush.msra.mxu0 %v43_v23  ;;  %196 = vmatpush.msra.mxu2 %v43_v23 }
  0x1d   :  { %105 = vmatpush.msra.mxu1 %v42_v20  ;;  %213 = vmatpush.msra.mxu3 %v42_v20 }
  0x1e   :  { %82 = vmatpush.msra.mxu0 %v41_v25  ;;  %197 = vmatpush.msra.mxu2 %v41_v25 }
  0x1f   :  { %106 = vmatpush.msra.mxu1 %v40_v22  ;;  %214 = vmatpush.msra.mxu3 %v40_v22 }
  0x20   :  { %83 = vmatpush.msra.mxu0 %v39_v27  ;;  %198 = vmatpush.msra.mxu2 %v39_v27 }
  0x21   :  { %107 = vmatpush.msra.mxu1 %v38_v24  ;;  %215 = vmatpush.msra.mxu3 %v38_v24 }
  0x22   :  { %84 = vmatpush.msra.mxu0 %v37_v31  ;;  %199 = vmatpush.msra.mxu2 %v37_v31 }
  0x23   :  { %108 = vmatpush.msra.mxu1 %v36_v26  ;;  %216 = vmatpush.msra.mxu3 %v36_v26 }
  0x24   :  { %85 = vmatpush.msra.mxu0 %v35_v32  ;;  %200 = vmatpush.msra.mxu2 %v35_v32 }
  0x25   :  { %109 = vmatpush.msra.mxu1 %v34_v28  ;;  %217 = vmatpush.msra.mxu3 %v34_v28 }
  0x26   :  { %110 = vmatmul.f32.vlgmr.msra.gmra.mxu1 %v316_v29  ;;  %113 = vmatmul.f32.vlgmr.msra.gmra.mxu3 %v321_v30 }
  0x27   :  { %86 = vmatpush.msra.mxu0 %v33_v33  ;;  %201 = vmatpush.msra.mxu2 %v33_v33 }
  0x28   :  { %87 = vmatmul.f32.vlgmr.msra.gmra.mxu0 %v316_v29  ;;  %90 = vmatmul.f32.vlgmr.msra.gmra.mxu2 %v321_v30 }
  0xa3   :  { %v111_v36 = vpop.f32.mrf.mxu1 }
  0xa4   :  { %v112_v37 = vadd.f32 %v111_v36, %v68_v35 }
  0xa5   :  { %v88_v45 = vpop.f32.mrf.mxu0 }
  0xa6   :  { %v184_v38 = vmul.f32 -1.442695, %v112_v37  ;;  %v89_v48 = vadd.f32 %v88_v45, %v67_v44 }
  0xa8   :  { %224 = vpow2.f32 %v184_v38  ;;  %v117_v53 = vmax.f32 %v89_v48, 0.0 }
  0xa9   :  { %v114_v39 = vpop.f32.mrf.mxu3 }
  0xaa   :  { %v115_v40 = vadd.f32 %v114_v39, %v68_v35  ;;  %v157_v61 = vsub.f32 %v117_v53, %v316_v29 }
  0xab   :  { %v91_v51 = vpop.f32.mrf.mxu2 }
  0xac   :  { %v185_v41 = vmul.f32 -1.442695, %v115_v40  ;;  %v92_v55 = vadd.f32 %v91_v51, %v67_v44 }
  0xae   :  { %v225_v42 = vpop.eup %224  ;;  %226 = vpow2.f32 %v185_v41  ;;  %v118_v1 = vmax.f32 %v92_v55, 0.0 }
  0xaf   :  { %v125_v43 = vadd.f32 1.0, %v225_v42 }
  0xb0   :  { %v158_v9 = vsub.f32 %v118_v1, %v321_v30 }
  0xb1   :  { %228 = vrcp.f32 %v125_v43  ;;  %v138_v54 = vand.u32 2147483648, %v125_v43  ;;  %vm132_vm0 = vweird.f32 %v125_v43  ;;  %v136_v57 = vand.u32 2147483647, %v125_v43 }
  0xb3   :  { %v139_v62 = vor.u32 1.1754944e-38, %v138_v54  ;;  %vm137_vm3 = vcmp.eq.f32.partialorder %v136_v57, 8.507059e+37 }
  0xb4   :  { %v227_v46 = vpop.eup %226 }
  0xb5   :  { %v126_v47 = vadd.f32 1.0, %v227_v46 }
  0xb7   :  { %v229_v49 = vpop.eup %228  ;;  %230 = vrcp.f32 %v126_v47  ;;  %v153_v3 = vand.u32 2147483648, %v126_v47  ;;  %v151_v6 = vand.u32 2147483647, %v126_v47  ;;  %vm147_vm5 = vweird.f32 %v126_v47 }
  0xb8   :  { %v128_v50 = vmul.f32 %v229_v49, %v125_v43  ;;  %vm133_vm1 = vweird.f32 %v229_v49 }
  0xb9   :  { %vm134_vm2 = vmor %vm132_vm0, %vm133_vm1  ;;  %v154_v10 = vor.u32 1.1754944e-38, %v153_v3  ;;  %vm152_vm7 = vcmp.eq.f32.partialorder %v151_v6, 8.507059e+37 }
  0xba   :  { %v129_v52 = vsub.f32 1.0, %v128_v50 }
  0xbc   :  { %v130_v56 = vmul.f32 %v229_v49, %v129_v52 }
  0xbd   :  { %v231_v58 = vpop.eup %230 }
  0xbe   :  { %v143_v59 = vmul.f32 %v231_v58, %v126_v47  ;;  %v131_v60 = vadd.f32 %v229_v49, %v130_v56  ;;  %vm148_vm4 = vweird.f32 %v231_v58 }
  0xbf   :  { %vm149_vm6 = vmor %vm147_vm5, %vm148_vm4 }
  0xc0   :  { %v144_v63 = vsub.f32 1.0, %v143_v59  ;;  %v135_v0 = vsel %vm134_vm2, %v229_v49, %v131_v60 }
  0xc1   :  { %v140_v2 = vsel %vm137_vm3, %v139_v62, %v135_v0 }
  0xc2   :  { %v159_v4 = vmul.f32 %v157_v61, %v140_v2  ;;  %v145_v5 = vmul.f32 %v231_v58, %v144_v63 }
  0xc4   :  { %v161_v7 = vadd.f32 %v159_v4, %v316_v29  ;;  %v146_v8 = vadd.f32 %v231_v58, %v145_v5 }
  0xc6   :  { %163 = vst [vmem:[#allocation5] sm:$0xff] %v161_v7  ;;  %v150_v11 = vsel %vm149_vm6, %v231_v58, %v146_v8 }
  0xc7   :  { %v155_v12 = vsel %vm152_vm7, %v154_v10, %v150_v11 }
  0xc8   :  { %v160_v13 = vmul.f32 %v158_v9, %v155_v12 }
  0xca   :  { %v162_v14 = vadd.f32 %v160_v13, %v321_v30 }
  0xcc   :  { %164 = vst [vmem:[#allocation5 + $0x8] sm:$0xff] %v162_v14 }
  0xcd   :  { %177 = dma.vmem_to_hbm [thread:$0]  %s170_s23, 256, %s172_s26, [#allocation4], %s288_s27, %s288_s27, %s289_s28  }
  0xce   :  { %282 = dma.done.wait [#allocation4], 256  }
  0xcf   :  { %283 = vsyncadd [#allocation4], 4294967040 }
  0xd0   :  { %182 = vsyncpa [#allocation3], 1 }
  0xd1   :  { %183 = vsyncpa [#allocation4], 1 }

</bundles_post_ra>
